<compile_context>
chip_gen: v7x
topology: tpu7x:2x2x1
jax: 0.10.0
libtpu: 0.0.40
codegen_flags: <defaults>
</compile_context>

<pallas_src>
import jax
import jax.numpy as jnp
from jax.experimental import pallas as pl
from jax.experimental.pallas import tpu as pltpu

LANE = 128       # vreg lane width
SUBLANE = 8      # vreg sublane count (f32)
NEG_INF = -1e30  # bias for padded logit columns -> exp() == 0
MIB = 1024 * 1024


def _round_up(x, m):
    return (x + m - 1) // m * m


def _cdiv(a, b):
    return -(-a // b)


def mlp_softmax_kernel(x_ref, w1_ref, b1_ref, w2_ref, b2_ref, o_ref):
    # fc1: x @ W1 + b1, ReLU.  bf16 MXU operands, f32 accumulate (cast happens here,
    # so no wrapper-side HBM round-trip is needed for x).
    x = x_ref[...].astype(jnp.bfloat16)                                # [TM, Din_p]
    h = jnp.dot(x, w1_ref[...], preferred_element_type=jnp.float32)    # [TM, H_p] f32
    h = jnp.maximum(h + b1_ref[...], 0.0).astype(jnp.bfloat16)

    # fc2: h @ W2 + b2.  Padded output columns have zero weights and a -1e30 bias.
    logits = jnp.dot(h, w2_ref[...], preferred_element_type=jnp.float32) + b2_ref[...]

    # Numerically stable softmax along the last axis, all in f32.
    m = jnp.max(logits, axis=-1, keepdims=True)
    e = jnp.exp(logits - m)                       # pad columns -> exp(-huge) == 0
    denom = jnp.sum(e, axis=-1, keepdims=True)
    o_ref[...] = (e * pl.reciprocal(denom, approx=True)).astype(o_ref.dtype)


def prepare_params(w1, b1, w2, b2):
    """Pad/cast the static parameters ONCE (keep out of the per-call hot path).

    w1: [d_in, d_h] (PyTorch fc1.weight.T), b1: [d_h]
    w2: [d_h, d_out] (PyTorch fc2.weight.T), b2: [d_out]
    """
    d_in, d_h = w1.shape
    d_out = w2.shape[1]
    d_in_p, d_h_p, d_out_p = (_round_up(d, LANE) for d in (d_in, d_h, d_out))

    w1_p = jnp.zeros((d_in_p, d_h_p), jnp.bfloat16).at[:d_in, :d_h].set(
        w1.astype(jnp.bfloat16))
    b1_p = jnp.zeros((1, d_h_p), jnp.float32).at[:, :d_h].set(
        jnp.reshape(b1, (1, d_h)).astype(jnp.float32))
    w2_p = jnp.zeros((d_h_p, d_out_p), jnp.bfloat16).at[:d_h, :d_out].set(
        w2.astype(jnp.bfloat16))
    # Padded logit columns: zero weight + NEG_INF bias so softmax ignores them exactly.
    b2_p = jnp.full((1, d_out_p), NEG_INF, jnp.float32).at[:, :d_out].set(
        jnp.reshape(b2, (1, d_out)).astype(jnp.float32))
    return (w1_p, b1_p, w2_p, b2_p), d_out


def _tile_plan(B, d_in_p, d_h_p, d_out_p):
    """Pick (tm, n_steps, padded batch, vmem limit) with explicit VMEM accounting."""
    budget = 48 * MIB  # per-TC working-set budget; safe inside v7x's 64 MiB VMEM.

    kind = ""
    try:
        kind = jax.devices()[0].device_kind.lower()
    except Exception:
        pass
    is_v5e = ("v5 lite" in kind) or ("v5e" in kind) or ("v5lite" in kind)
    # v5e: only 1 vector-store slot, no bf16 VPU/EUP -> f32 intermediates spill sooner.
    row_cap = 256 if is_v5e else 512

    # Resident (ideally single-buffered) weights + biases.
    const_bytes = (d_in_p * d_h_p + d_h_p * d_out_p) * 2 + (d_h_p + d_out_p) * 4
    # Per-batch-row bytes: 2x f32 x tile, 2x f32 out tile, h (f32+bf16), logits/exp f32.
    per_row = d_in_p * 4 * 2 + d_out_p * 4 * 2 + d_h_p * 6 + d_out_p * 8
    # TODO(synk): if const_bytes exceeds ~budget/2 (large hidden sizes), add K/N grid
    # axes and tile the weights (reduction axis last + f32 accumulator) instead of
    # keeping whole layers resident.
    vmem_rows = (budget - const_bytes) // max(per_row, 1)
    vmem_rows = max(SUBLANE, (vmem_rows // SUBLANE) * SUBLANE)
    row_cap = max(SUBLANE, min(row_cap, vmem_rows))

    n_steps = _cdiv(B, row_cap)
    if B > SUBLANE:
        n_steps = max(n_steps, 2)  # give both v7x TensorCores at least one batch tile
    tm = _round_up(_cdiv(B, n_steps), SUBLANE)
    b_p = n_steps * tm             # wastes < 8 rows per step (was up to tm-1 rows)

    vmem_limit = int(min(56 * MIB, max(32 * MIB, 2 * (const_bytes + tm * per_row))))
    return tm, n_steps, b_p, vmem_limit


def network_forward(x, padded_params, d_out):
    """Pallas implementation of Network.forward.  Returns [B, d_out] f32 softmax."""
    w1_p, b1_p, w2_p, b2_p = padded_params
    B, d_in = x.shape
    d_in_p, d_h_p = w1_p.shape
    d_out_p = w2_p.shape[1]

    tm, n_steps, b_p, vmem_limit = _tile_plan(B, d_in_p, d_h_p, d_out_p)

    # Pad x only when needed; aligned inputs pass straight through (no extra HBM copy).
    if (B, d_in) != (b_p, d_in_p):
        x_in = jnp.zeros((b_p, d_in_p), x.dtype).at[:B, :d_in].set(x)
    else:
        x_in = x

    def build(single_buffer_weights):
        # Constant operands re-use block (0,0) every step; request single-buffering.
        pm = {"pipeline_mode": pl.Buffered(1)} if single_buffer_weights else {}
        return pl.pallas_call(
            mlp_softmax_kernel,
            out_shape=jax.ShapeDtypeStruct((b_p, d_out_p), jnp.float32),
            grid_spec=pltpu.PrefetchScalarGridSpec(
                num_scalar_prefetch=0,
                grid=(n_steps,),
                in_specs=[
                    pl.BlockSpec((tm, d_in_p), lambda i: (i, 0)),          # streamed x
                    pl.BlockSpec((d_in_p, d_h_p), lambda i: (0, 0), **pm),  # resident W1
                    pl.BlockSpec((1, d_h_p), lambda i: (0, 0), **pm),       # resident b1
                    pl.BlockSpec((d_h_p, d_out_p), lambda i: (0, 0), **pm),  # resident W2
                    pl.BlockSpec((1, d_out_p), lambda i: (0, 0), **pm),      # resident b2
                ],
                out_specs=pl.BlockSpec((tm, d_out_p), lambda i: (i, 0)),   # lane-dense out
            ),
            compiler_params=pltpu.CompilerParams(
                dimension_semantics=("parallel",),   # megacore / v7x 2-TC batch sharding
                vmem_limit_bytes=vmem_limit,
            ),
        )

    try:
        out_p = build(True)(x_in, w1_p, b1_p, w2_p, b2_p)
    except Exception:
        # pipeline_mode=pl.Buffered(1) unsupported on this build -> default buffering.
        out_p = build(False)(x_in, w1_p, b1_p, w2_p, b2_p)

    # TODO(synk): for consumers that tolerate it, emit bf16 and/or return the padded
    # block and fuse this slice into the consumer to trim the f32 writeback.
    return out_p[:B, :d_out]


def init_params(key, input_layer, hidden_layer, output_layer):
    """Deterministic init mimicking nn.Linear's U(-1/sqrt(fan_in), 1/sqrt(fan_in))."""
    k1, k2, k3, k4 = jax.random.split(key, 4)
    bound1 = 1.0 / jnp.sqrt(input_layer)
    bound2 = 1.0 / jnp.sqrt(hidden_layer)
    w1 = jax.random.uniform(k1, (input_layer, hidden_layer), jnp.float32,
                            minval=-bound1, maxval=bound1)
    b1 = jax.random.uniform(k2, (hidden_layer,), jnp.float32,
                            minval=-bound1, maxval=bound1)
    w2 = jax.random.uniform(k3, (hidden_layer, output_layer), jnp.float32,
                            minval=-bound2, maxval=bound2)
    b2 = jax.random.uniform(k4, (output_layer,), jnp.float32,
                            minval=-bound2, maxval=bound2)
    return w1, b1, w2, b2


if __name__ == "__main__":
    # Small shapes consistent with Network(input_layer, hidden_layer, output_layer).
    batch, input_layer, hidden_layer, output_layer = 8, 32, 32, 16

    key = jax.random.PRNGKey(0)
    kx, kp = jax.random.split(key)
    x = jax.random.normal(kx, (batch, input_layer), jnp.float32)
    w1, b1, w2, b2 = init_params(kp, input_layer, hidden_layer, output_layer)

    padded_params, d_out = prepare_params(w1, b1, w2, b2)   # once, outside hot path
    out = network_forward(x, padded_params, d_out)
    out = jax.block_until_ready(out)

    # Reference 1: pure-JAX with the same bf16 operand / f32 accumulate recipe.
    xb, w1b, w2b = (t.astype(jnp.bfloat16) for t in (x, w1, w2))
    h_ref = jnp.maximum(
        jnp.dot(xb, w1b, preferred_element_type=jnp.float32) + b1[None, :], 0.0
    ).astype(jnp.bfloat16)
    logits_ref = jnp.dot(h_ref, w2b, preferred_element_type=jnp.float32) + b2[None, :]
    ref_bf16 = jax.nn.softmax(logits_ref, axis=-1)

    # Reference 2: full f32 math (semantic check, looser tolerance for bf16 operands).
    ref_f32 = jax.nn.softmax(jnp.maximum(x @ w1 + b1[None, :], 0.0) @ w2 + b2[None, :],
                             axis=-1)

    assert out.shape == (batch, output_layer), "bad output shape"
    assert jnp.allclose(out, ref_bf16, atol=2e-3), "mismatch vs bf16-matched reference"
    assert jnp.allclose(out, ref_f32, atol=5e-2), "mismatch vs f32 reference"
    assert jnp.allclose(jnp.sum(out, axis=-1), 1.0, atol=5e-3), "rows must sum to ~1"
    assert bool(jnp.all(out >= 0.0)), "softmax outputs must be non-negative"

    print("KERNEL_OK")
</pallas_src>

<mosaic_0001>
module attributes {stable_mosaic.version = 11 : i64} {
  func.func @mlp_softmax_kernel(%arg0: i32, %arg1: memref<8x128xf32, #tpu.memory_space<vmem>>, %arg2: memref<128x128xbf16, #tpu.memory_space<vmem>>, %arg3: memref<1x128xf32, #tpu.memory_space<vmem>>, %arg4: memref<128x128xbf16, #tpu.memory_space<vmem>>, %arg5: memref<1x128xf32, #tpu.memory_space<vmem>>, %arg6: memref<8x128xf32, #tpu.memory_space<vmem>>) attributes {dimension_semantics = [#tpu.dimension_semantics<parallel>], iteration_bounds = array<i64: 1>, scalar_prefetch = 0 : i64, scratch_operands = 0 : i64, tpu.core_type = #tpu.core_type<tc>, window_params = [{transform_indices = @transform_0, window_bounds = array<i64: 8, 128>}, {pipeline_mode = #tpu.pipeline_mode<synchronous>, transform_indices = @transform_1, window_bounds = array<i64: 128, 128>}, {pipeline_mode = #tpu.pipeline_mode<synchronous>, transform_indices = @transform_2, window_bounds = array<i64: 1, 128>}, {pipeline_mode = #tpu.pipeline_mode<synchronous>, transform_indices = @transform_3, window_bounds = array<i64: 128, 128>}, {pipeline_mode = #tpu.pipeline_mode<synchronous>, transform_indices = @transform_4, window_bounds = array<i64: 1, 128>}, {transform_indices = @transform_5, window_bounds = array<i64: 8, 128>}]} {
    %c0 = arith.constant 0 : index
    %c0_0 = arith.constant 0 : index
    %0 = vector.load %arg1[%c0, %c0_0] : memref<8x128xf32, #tpu.memory_space<vmem>>, vector<8x128xf32>
    %1 = arith.truncf %0 : vector<8x128xf32> to vector<8x128xbf16>
    %c0_1 = arith.constant 0 : index
    %c0_2 = arith.constant 0 : index
    %2 = vector.load %arg2[%c0_1, %c0_2] : memref<128x128xbf16, #tpu.memory_space<vmem>>, vector<128x128xbf16>
    %cst = arith.constant dense<0.000000e+00> : vector<8x128xf32>
    %3 = tpu.matmul %1, %2, %cst {dimension_numbers = #tpu.dot_dimension_numbers<[1], [0], [0], [1], [0, 0, 1, 1], [], []>} : vector<8x128xbf16>, vector<128x128xbf16>, vector<8x128xf32> -> vector<8x128xf32>
    %c0_3 = arith.constant 0 : index
    %c0_4 = arith.constant 0 : index
    %4 = vector.load %arg3[%c0_3, %c0_4] : memref<1x128xf32, #tpu.memory_space<vmem>>, vector<1x128xf32>
    %5 = vector.broadcast %4 : vector<1x128xf32> to vector<8x128xf32>
    %6 = arith.addf %3, %5 : vector<8x128xf32>
    %cst_5 = arith.constant 0.000000e+00 : f32
    %7 = vector.broadcast %cst_5 : f32 to vector<8x128xf32>
    %8 = arith.maximumf %6, %7 : vector<8x128xf32>
    %9 = arith.truncf %8 : vector<8x128xf32> to vector<8x128xbf16>
    %c0_6 = arith.constant 0 : index
    %c0_7 = arith.constant 0 : index
    %10 = vector.load %arg4[%c0_6, %c0_7] : memref<128x128xbf16, #tpu.memory_space<vmem>>, vector<128x128xbf16>
    %cst_8 = arith.constant dense<0.000000e+00> : vector<8x128xf32>
    %11 = tpu.matmul %9, %10, %cst_8 {dimension_numbers = #tpu.dot_dimension_numbers<[1], [0], [0], [1], [0, 0, 1, 1], [], []>} : vector<8x128xbf16>, vector<128x128xbf16>, vector<8x128xf32> -> vector<8x128xf32>
    %c0_9 = arith.constant 0 : index
    %c0_10 = arith.constant 0 : index
    %12 = vector.load %arg5[%c0_9, %c0_10] : memref<1x128xf32, #tpu.memory_space<vmem>>, vector<1x128xf32>
    %13 = vector.broadcast %12 : vector<1x128xf32> to vector<8x128xf32>
    %14 = arith.addf %11, %13 : vector<8x128xf32>
    %cst_11 = arith.constant dense<0xFF800000> : vector<8xf32>
    %15 = vector.multi_reduction <maximumf>, %14, %cst_11 [1] : vector<8x128xf32> to vector<8xf32>
    %16 = vector.shape_cast %15 : vector<8xf32> to vector<8x1xf32>
    %17 = vector.broadcast %16 : vector<8x1xf32> to vector<8x128xf32>
    %18 = arith.subf %14, %17 : vector<8x128xf32>
    %19 = math.exp %18 : vector<8x128xf32>
    %cst_12 = arith.constant dense<0.000000e+00> : vector<8xf32>
    %20 = vector.multi_reduction <add>, %19, %cst_12 [1] : vector<8x128xf32> to vector<8xf32>
    %21 = vector.shape_cast %20 : vector<8xf32> to vector<8x1xf32>
    %22 = tpu.reciprocal %21 {approx = true} : vector<8x1xf32> -> vector<8x1xf32>
    %23 = vector.broadcast %22 : vector<8x1xf32> to vector<8x128xf32>
    %24 = arith.mulf %19, %23 : vector<8x128xf32>
    %c0_13 = arith.constant 0 : index
    %c0_14 = arith.constant 0 : index
    %25 = vector.load %arg6[%c0_13, %c0_14] : memref<8x128xf32, #tpu.memory_space<vmem>>, vector<8x128xf32>
    tpu.vector_store %arg6[%c0_13, %c0_14], %24 {strides = array<i32>} : memref<8x128xf32, #tpu.memory_space<vmem>>, vector<8x128xf32>,
    return
  }
  func.func @transform_0(%arg0: i32) -> (i32, i32) {
    %c0_i32 = arith.constant 0 : i32
    %c0_i32_0 = arith.constant 0 : i32
    return %arg0, %c0_i32 : i32, i32
  }
  func.func @transform_1(%arg0: i32) -> (i32, i32) {
    %c0_i32 = arith.constant 0 : i32
    %c0_i32_0 = arith.constant 0 : i32
    %c0_i32_1 = arith.constant 0 : i32
    return %c0_i32, %c0_i32_0 : i32, i32
  }
  func.func @transform_2(%arg0: i32) -> (i32, i32) {
    %c0_i32 = arith.constant 0 : i32
    %c0_i32_0 = arith.constant 0 : i32
    %c0_i32_1 = arith.constant 0 : i32
    return %c0_i32, %c0_i32_0 : i32, i32
  }
  func.func @transform_3(%arg0: i32) -> (i32, i32) {
    %c0_i32 = arith.constant 0 : i32
    %c0_i32_0 = arith.constant 0 : i32
    %c0_i32_1 = arith.constant 0 : i32
    return %c0_i32, %c0_i32_0 : i32, i32
  }
  func.func @transform_4(%arg0: i32) -> (i32, i32) {
    %c0_i32 = arith.constant 0 : i32
    %c0_i32_0 = arith.constant 0 : i32
    %c0_i32_1 = arith.constant 0 : i32
    return %c0_i32, %c0_i32_0 : i32, i32
  }
  func.func @transform_5(%arg0: i32) -> (i32, i32) {
    %c0_i32 = arith.constant 0 : i32
    %c0_i32_0 = arith.constant 0 : i32
    return %arg0, %c0_i32 : i32, i32
  }
}

module attributes {stable_mosaic.version = 11 : i64} {
  func.func @mlp_softmax_kernel(%arg0: i32, %arg1: memref<8x128xf32, #tpu.memory_space<vmem>>, %arg2: memref<128x128xbf16, #tpu.memory_space<vmem>>, %arg3: memref<1x128xf32, #tpu.memory_space<vmem>>, %arg4: memref<128x128xbf16, #tpu.memory_space<vmem>>, %arg5: memref<1x128xf32, #tpu.memory_space<vmem>>, %arg6: memref<8x128xf32, #tpu.memory_space<vmem>>) attributes {dimension_semantics = [#tpu.dimension_semantics<parallel>], iteration_bounds = array<i64: 1>, scalar_prefetch = 0 : i64, scratch_operands = 0 : i64, tpu.core_type = #tpu.core_type<tc>, window_params = [{transform_indices = @transform_0, window_bounds = array<i64: 8, 128>}, {pipeline_mode = #tpu.pipeline_mode<synchronous>, transform_indices = @transform_1, window_bounds = array<i64: 128, 128>}, {pipeline_mode = #tpu.pipeline_mode<synchronous>, transform_indices = @transform_2, window_bounds = array<i64: 1, 128>}, {pipeline_mode = #tpu.pipeline_mode<synchronous>, transform_indices = @transform_3, window_bounds = array<i64: 128, 128>}, {pipeline_mode = #tpu.pipeline_mode<synchronous>, transform_indices = @transform_4, window_bounds = array<i64: 1, 128>}, {transform_indices = @transform_5, window_bounds = array<i64: 8, 128>}]} {
    %c0 = arith.constant 0 : index
    %c0_0 = arith.constant 0 : index
    %0 = vector.load %arg1[%c0, %c0_0] : memref<8x128xf32, #tpu.memory_space<vmem>>, vector<8x128xf32>
    %1 = arith.truncf %0 : vector<8x128xf32> to vector<8x128xbf16>
    %c0_1 = arith.constant 0 : index
    %c0_2 = arith.constant 0 : index
    %2 = vector.load %arg2[%c0_1, %c0_2] : memref<128x128xbf16, #tpu.memory_space<vmem>>, vector<128x128xbf16>
    %cst = arith.constant dense<0.000000e+00> : vector<8x128xf32>
    %3 = tpu.matmul %1, %2, %cst {dimension_numbers = #tpu.dot_dimension_numbers<[1], [0], [0], [1], [0, 0, 1, 1], [], []>} : vector<8x128xbf16>, vector<128x128xbf16>, vector<8x128xf32> -> vector<8x128xf32>
    %c0_3 = arith.constant 0 : index
    %c0_4 = arith.constant 0 : index
    %4 = vector.load %arg3[%c0_3, %c0_4] : memref<1x128xf32, #tpu.memory_space<vmem>>, vector<1x128xf32>
    %5 = vector.broadcast %4 : vector<1x128xf32> to vector<8x128xf32>
    %6 = arith.addf %3, %5 : vector<8x128xf32>
    %cst_5 = arith.constant 0.000000e+00 : f32
    %7 = vector.broadcast %cst_5 : f32 to vector<8x128xf32>
    %8 = arith.maximumf %6, %7 : vector<8x128xf32>
    %9 = arith.truncf %8 : vector<8x128xf32> to vector<8x128xbf16>
    %c0_6 = arith.constant 0 : index
    %c0_7 = arith.constant 0 : index
    %10 = vector.load %arg4[%c0_6, %c0_7] : memref<128x128xbf16, #tpu.memory_space<vmem>>, vector<128x128xbf16>
    %cst_8 = arith.constant dense<0.000000e+00> : vector<8x128xf32>
    %11 = tpu.matmul %9, %10, %cst_8 {dimension_numbers = #tpu.dot_dimension_numbers<[1], [0], [0], [1], [0, 0, 1, 1], [], []>} : vector<8x128xbf16>, vector<128x128xbf16>, vector<8x128xf32> -> vector<8x128xf32>
    %c0_9 = arith.constant 0 : index
    %c0_10 = arith.constant 0 : index
    %12 = vector.load %arg5[%c0_9, %c0_10] : memref<1x128xf32, #tpu.memory_space<vmem>>, vector<1x128xf32>
    %13 = vector.broadcast %12 : vector<1x128xf32> to vector<8x128xf32>
    %14 = arith.addf %11, %13 : vector<8x128xf32>
    %cst_11 = arith.constant dense<0xFF800000> : vector<8xf32>
    %15 = vector.multi_reduction <maximumf>, %14, %cst_11 [1] : vector<8x128xf32> to vector<8xf32>
    %16 = vector.shape_cast %15 : vector<8xf32> to vector<8x1xf32>
    %17 = vector.broadcast %16 : vector<8x1xf32> to vector<8x128xf32>
    %18 = arith.subf %14, %17 : vector<8x128xf32>
    %19 = math.exp %18 : vector<8x128xf32>
    %cst_12 = arith.constant dense<0.000000e+00> : vector<8xf32>
    %20 = vector.multi_reduction <add>, %19, %cst_12 [1] : vector<8x128xf32> to vector<8xf32>
    %21 = vector.shape_cast %20 : vector<8xf32> to vector<8x1xf32>
    %22 = tpu.reciprocal %21 {approx = true} : vector<8x1xf32> -> vector<8x1xf32>
    %23 = vector.broadcast %22 : vector<8x1xf32> to vector<8x128xf32>
    %24 = arith.mulf %19, %23 : vector<8x128xf32>
    %c0_13 = arith.constant 0 : index
    %c0_14 = arith.constant 0 : index
    %25 = vector.load %arg6[%c0_13, %c0_14] : memref<8x128xf32, #tpu.memory_space<vmem>>, vector<8x128xf32>
    tpu.vector_store %arg6[%c0_13, %c0_14], %24 {strides = array<i32>} : memref<8x128xf32, #tpu.memory_space<vmem>>, vector<8x128xf32>,
    return
  }
  func.func @transform_0(%arg0: i32) -> (i32, i32) {
    %c0_i32 = arith.constant 0 : i32
    %c0_i32_0 = arith.constant 0 : i32
    return %arg0, %c0_i32 : i32, i32
  }
  func.func @transform_1(%arg0: i32) -> (i32, i32) {
    %c0_i32 = arith.constant 0 : i32
    %c0_i32_0 = arith.constant 0 : i32
    %c0_i32_1 = arith.constant 0 : i32
    return %c0_i32, %c0_i32_0 : i32, i32
  }
  func.func @transform_2(%arg0: i32) -> (i32, i32) {
    %c0_i32 = arith.constant 0 : i32
    %c0_i32_0 = arith.constant 0 : i32
    %c0_i32_1 = arith.constant 0 : i32
    return %c0_i32, %c0_i32_0 : i32, i32
  }
  func.func @transform_3(%arg0: i32) -> (i32, i32) {
    %c0_i32 = arith.constant 0 : i32
    %c0_i32_0 = arith.constant 0 : i32
    %c0_i32_1 = arith.constant 0 : i32
    return %c0_i32, %c0_i32_0 : i32, i32
  }
  func.func @transform_4(%arg0: i32) -> (i32, i32) {
    %c0_i32 = arith.constant 0 : i32
    %c0_i32_0 = arith.constant 0 : i32
    %c0_i32_1 = arith.constant 0 : i32
    return %c0_i32, %c0_i32_0 : i32, i32
  }
  func.func @transform_5(%arg0: i32) -> (i32, i32) {
    %c0_i32 = arith.constant 0 : i32
    %c0_i32_0 = arith.constant 0 : i32
    return %arg0, %c0_i32 : i32, i32
  }
}

</mosaic_0001>

<bundles_post_ra>
// kernel: tpu_custom_call.1
= control target key start
LH: loop header
LB: loop body
LE: loop exit
PB: predicated region body
PF: predicated region fallthrough
CT: control target
= control target key end

     0   :  { %10 = vsyncpa [#allocation3], 0  ;;  %s609_s0 = inlined_call_operand.hbm [shape: f32[8,128], index: 0, kind: input, shape index: {}]   ;;  %s610_s1 = inlined_call_operand.hbm [shape: bf16[128,128], index: 1, kind: input, shape index: {}]   ;;  %s611_s2 = inlined_call_operand.vmem [shape: f32[1,128], index: 2, kind: input, shape index: {}]   ;;  %s612_s3 = inlined_call_operand.hbm [shape: bf16[128,128], index: 3, kind: input, shape index: {}]   ;;  %s613_s4 = inlined_call_operand.vmem [shape: f32[1,128], index: 4, kind: input, shape index: {}]   ;;  %s614_s5 = inlined_call_operand.hbm [shape: f32[8,128], index: 5, kind: output, shape index: {}]  }
   0x1   :  { %11 = vsyncpa [#allocation6], 0 }
   0x2   :  { %12 = vsyncpa [#allocation4], 0  ;;  %s511_s18 = smov [#allocation5]   ;;  %s417_s22 = scalar_lea.hbm %s610_s1, 1024 }
   0x3   :  { %s28_s19 = sshll.u32 %s511_s18, 4  ;;  %p418_p0 = scmp.ne.s32.totalorder %s610_s1, %s417_s22  ;;  %s29_s19 = int_to_ptr.vmem [resolvable:$true] %s28_s19 }
   0x4   :  { %p421_p1 = scmp.lt.u32.totalorder %s417_s22, %s610_s1 }
   0x6   :  { %p423_p2 = pnand %p421_p1, %p418_p0 }
   0x8   :  { %426 = shalt.err (!%p423_p2)
}
   0x9   :  { %s427_s27 = scalar_lea.vmem %s29_s19, 1024  ;;  %p432_p4 = scmp.lt.s32.totalorder %s29_s19, %s29_s19 }
   0xa   :  { %p428_p3 = scmp.ne.s32.totalorder %s29_s19, %s427_s27  ;;  %p433_p5 = scmp.lt.s32.totalorder %s427_s27, %s427_s27 }
   0xc   :  { %p434_p6 = por %p433_p5, %p432_p4 }
   0xe   :  { %p435_p7 = pnand %p434_p6, %p428_p3 }
  0x10   :  { %438 = shalt.err (!%p435_p7)
}
  0x11   :  { %s512_s28 = smov 64   ;;  %s513_s29 = smov 4  }
  0x12   :  { %34 = dma.hbm_to_vmem [thread:$0]  %s610_s1, 1024, %s29_s19, [#allocation6], %s512_s28, %s512_s28, %s513_s29  }
  0x13   :  { %s514_s7 = smov [#allocation2]   ;;  %s515_s9 = smov [#allocation7]  }
  0x14   :  { %s19_s8 = sshll.u32 %s514_s7, 4  ;;  %s42_s10 = sshll.u32 %s515_s9, 4  ;;  %s20_s8 = int_to_ptr.vmem [resolvable:$true] %s19_s8  ;;  %s43_s10 = int_to_ptr.vmem [resolvable:$true] %s42_s10 }
  0x15   :  { %s439_s13 = scalar_lea.hbm %s609_s0, 128 }
  0x16   :  { %p440_p8 = scmp.ne.s32.totalorder %s609_s0, %s439_s13  ;;  %p443_p9 = scmp.lt.u32.totalorder %s439_s13, %s609_s0 }
  0x18   :  { %p445_p10 = pnand %p443_p9, %p440_p8 }
  0x1a   :  { %448 = shalt.err (!%p445_p10)
}
  0x1b   :  { %s449_s1 = scalar_lea.vmem %s20_s8, 128  ;;  %p454_p12 = scmp.lt.s32.totalorder %s20_s8, %s20_s8 }
  0x1c   :  { %p450_p11 = scmp.ne.s32.totalorder %s20_s8, %s449_s1  ;;  %p455_p13 = scmp.lt.s32.totalorder %s449_s1, %s449_s1 }
  0x1e   :  { %p456_p0 = por %p455_p13, %p454_p12 }
  0x20   :  { %p457_p1 = pnand %p456_p0, %p450_p11 }
  0x22   :  { %460 = shalt.err (!%p457_p1)
}
  0x23   :  { %22 = dma.hbm_to_vmem [thread:$0]  %s609_s0, 128, %s20_s8, [#allocation3]  }
  0x24   :  { %s461_s22 = scalar_lea.hbm %s612_s3, 1024 }
  0x25   :  { %p462_p2 = scmp.ne.s32.totalorder %s612_s3, %s461_s22  ;;  %p465_p3 = scmp.lt.u32.totalorder %s461_s22, %s612_s3 }
  0x27   :  { %p467_p4 = pnand %p465_p3, %p462_p2 }
  0x29   :  { %470 = shalt.err (!%p467_p4)
}
  0x2a   :  { %s471_s27 = scalar_lea.vmem %s43_s10, 1024  ;;  %p476_p6 = scmp.lt.s32.totalorder %s43_s10, %s43_s10 }
  0x2b   :  { %p472_p5 = scmp.ne.s32.totalorder %s43_s10, %s471_s27  ;;  %p477_p7 = scmp.lt.s32.totalorder %s471_s27, %s471_s27 }
  0x2d   :  { %p478_p8 = por %p477_p7, %p476_p6 }
  0x2f   :  { %p479_p9 = pnand %p478_p8, %p472_p5 }
  0x31   :  { %482 = shalt.err (!%p479_p9)
}
  0x32   :  { %48 = dma.hbm_to_vmem [thread:$0]  %s612_s3, 1024, %s43_s10, [#allocation6], %s512_s28, %s512_s28, %s513_s29  }
  0x33   :  { %505 = dma.done.wait [#allocation3], 128  }
  0x34   :  { %506 = vsyncadd [#allocation3], 4294967168 }
  0x35   :  { %507 = dma.done.wait [#allocation6], 2048  }
  0x36   :  { %508 = vsyncadd [#allocation6], 4294965248  ;;  %v516_v0 = vmov 0.0   ;;  %vm517_vm0 = vmmov 0   ;;  %v397_v1 = vld [vmem:[#allocation5] sm:$0xff]   ;;  %v398_v2 = vld [vmem:[#allocation5 + $0x8] sm:$0xff]  }
  0x37   :  { %349 = vmatprep.subr.bf16.mxu0 %v516_v0  ;;  %365 = vmatprep.mubr.msk.bf16.mxu0 %vm517_vm0, %v516_v0  ;;  %v399_v3 = vld [vmem:[#allocation5 + $0x10] sm:$0xff]   ;;  %v405_v4 = vld [vmem:[#allocation7] sm:$0xff]   ;;  %v400_v5 = vld [vmem:[#allocation5 + $0x18] sm:$0xff]  }
  0x38   :  { %369 = vmatprep.subr.bf16.mxu1 %v516_v0  ;;  %385 = vmatprep.mubr.msk.bf16.mxu1 %vm517_vm0, %v516_v0  ;;  %v406_v6 = vld [vmem:[#allocation7 + $0x8] sm:$0xff]   ;;  %v401_v7 = vld [vmem:[#allocation5 + $0x20] sm:$0xff]   ;;  %v407_v8 = vld [vmem:[#allocation7 + $0x10] sm:$0xff]  }
  0x39   :  { %350 = vmatpush3.bf16.msra.mxu0 %v397_v1  ;;  %370 = vmatpush3.bf16.msra.mxu1 %v405_v4  ;;  %v402_v9 = vld [vmem:[#allocation5 + $0x28] sm:$0xff]   ;;  %v408_v10 = vld [vmem:[#allocation7 + $0x18] sm:$0xff]   ;;  %v403_v11 = vld [vmem:[#allocation5 + $0x30] sm:$0xff]  }
  0x3a   :  { %351 = vmatprep.subr.bf16.mxu0 %v516_v0  ;;  %371 = vmatprep.subr.bf16.mxu1 %v516_v0  ;;  %v409_v12 = vld [vmem:[#allocation7 + $0x20] sm:$0xff]   ;;  %v404_v13 = vld [vmem:[#allocation5 + $0x38] sm:$0xff]   ;;  %v410_v15 = vld [vmem:[#allocation7 + $0x28] sm:$0xff]  }
  0x3b   :  { %v61_v14 = vld [vmem:[#allocation2] sm:$0xff]  ;;  %v411_v17 = vld [vmem:[#allocation7 + $0x30] sm:$0xff]  }
  0x3c   :  { %v62_v16 = vpack.c.bf16 %v61_v14, %v61_v14  ;;  %v412_v18 = vld [vmem:[#allocation7 + $0x38] sm:$0xff]  }
  0x3d   :  { %352 = vmatpush3.bf16.msra.mxu0 %v398_v2  ;;  %372 = vmatpush3.bf16.msra.mxu1 %v406_v6  ;;  %v313_v19 = vld [vmem:[%s611_s2] ss:$0 sm:$0xff]  ;;  %s518_s2 = smov [#allocation8]  }
  0x3e   :  { %353 = vmatprep.subr.bf16.mxu0 %v516_v0  ;;  %373 = vmatprep.subr.bf16.mxu1 %v516_v0  ;;  %v322_v27 = vld [vmem:[%s613_s4] ss:$0 sm:$0xff]  ;;  %s303_s7 = sshll.u32 %s518_s2, 4  ;;  %s304_s7 = int_to_ptr.vmem [resolvable:$true] %s303_s7 }
  0x3f   :  { %s483_s4 = scalar_lea.vmem %s304_s7, 128  ;;  %p488_p11 = scmp.lt.s32.totalorder %s304_s7, %s304_s7 }
  0x40   :  { %p484_p10 = scmp.ne.s32.totalorder %s304_s7, %s483_s4  ;;  %p489_p12 = scmp.lt.s32.totalorder %s483_s4, %s483_s4 }
  0x41   :  { %354 = vmatpush3.bf16.msra.mxu0 %v399_v3  ;;  %374 = vmatpush3.bf16.msra.mxu1 %v407_v8 }
  0x42   :  { %355 = vmatprep.subr.bf16.mxu0 %v516_v0  ;;  %375 = vmatprep.subr.bf16.mxu1 %v516_v0  ;;  %p490_p13 = por %p489_p12, %p488_p11 }
  0x44   :  { %p491_p0 = pnand %p490_p13, %p484_p10 }
  0x45   :  { %356 = vmatpush3.bf16.msra.mxu0 %v400_v5  ;;  %376 = vmatpush3.bf16.msra.mxu1 %v408_v10 }
  0x46   :  { %357 = vmatprep.subr.bf16.mxu0 %v516_v0  ;;  %377 = vmatprep.subr.bf16.mxu1 %v516_v0 }
  0x49   :  { %358 = vmatpush3.bf16.msra.mxu0 %v401_v7  ;;  %378 = vmatpush3.bf16.msra.mxu1 %v409_v12 }
  0x4a   :  { %359 = vmatprep.subr.bf16.mxu0 %v516_v0  ;;  %379 = vmatprep.subr.bf16.mxu1 %v516_v0 }
  0x4d   :  { %360 = vmatpush3.bf16.msra.mxu0 %v402_v9  ;;  %380 = vmatpush3.bf16.msra.mxu1 %v410_v15 }
  0x4e   :  { %361 = vmatprep.subr.bf16.mxu0 %v516_v0  ;;  %381 = vmatprep.subr.bf16.mxu1 %v516_v0 }
  0x51   :  { %362 = vmatpush3.bf16.msra.mxu0 %v403_v11  ;;  %382 = vmatpush3.bf16.msra.mxu1 %v411_v17 }
  0x52   :  { %363 = vmatprep.subr.bf16.mxu0 %v516_v0  ;;  %383 = vmatprep.subr.bf16.mxu1 %v516_v0 }
  0x55   :  { %364 = vmatpush3.bf16.msra.mxu0 %v404_v13  ;;  %384 = vmatpush3.bf16.msra.mxu1 %v412_v18 }
  0x58   :  { %366 = vmatmul.mubr.bf16.vlgmr.msra.gmra.mrb[0].mxu0 %v62_v16 }
 0x12b   :  { %v168_v20 = vpop.f32.mrb[0].mxu0 }
 0x12c   :  { %v169_v21 = vadd.f32 %v313_v19, %v168_v20  ;;  %v367_v22 = vpop.f32.mrb[1].mxu0 }
 0x12d   :  { %v171_v23 = vpop.f32.mrb[2].mxu0 }
 0x12e   :  { %v174_v24 = vmax.f32 %v169_v21, 0.0  ;;  %v368_v25 = vpop.f32.mrb[3].mxu0 }
 0x130   :  { %v175_v26 = vpack.c.bf16 %v174_v24, %v174_v24 }
 0x132   :  { %386 = vmatmul.mubr.bf16.vlgmr.msra.gmra.mrb[0].mxu1 %v175_v26 }
 0x205   :  { %v281_v28 = vpop.f32.mrb[0].mxu1 }
 0x206   :  { %v282_v29 = vadd.f32 %v322_v27, %v281_v28  ;;  %v387_v30 = vpop.f32.mrb[1].mxu1 }
 0x207   :  { %v284_v31 = vpop.f32.mrb[2].mxu1 }
 0x208   :  { %287 = vmax.xlane.f32.xlu0 %v282_v29  ;;  %v388_v32 = vpop.f32.mrb[3].mxu1 }
 0x295   :  { %v288_v33 = vpop.xlane.xlu0 %287 }
 0x296   :  { %v289_v34 = vsub.f32 %v282_v29, %v288_v33 }
 0x298   :  { %v290_v35 = vmul.f32 1.442695, %v289_v34 }
 0x29a   :  { %413 = vpow2.f32 %v290_v35 }
 0x2a4   :  { %v414_v36 = vpop.eup %413 }
 0x2a5   :  { %292 = vadd.xlane.f32.xlu0 %v414_v36 }
 0x332   :  { %v293_v37 = vpop.xlane.xlu0 %292 }
 0x333   :  { %415 = vrcp.f32 %v293_v37 }
 0x33d   :  { %v416_v38 = vpop.eup %415 }
 0x33e   :  { %v295_v39 = vmul.f32 %v416_v38, %v414_v36 }
 0x340   :  { %296 = vst [vmem:[#allocation8] sm:$0xff] %v295_v39 }
 0x341   :  { %494 = shalt.err (!%p491_p0)
}
 0x342   :  { %s495_s10 = scalar_lea.hbm %s614_s5, 128 }
 0x343   :  { %p496_p1 = scmp.ne.s32.totalorder %s614_s5, %s495_s10  ;;  %p499_p2 = scmp.lt.u32.totalorder %s495_s10, %s614_s5 }
 0x345   :  { %p501_p3 = pnand %p499_p2, %p496_p1 }
 0x347   :  { %504 = shalt.err (!%p501_p3)
}
 0x348   :  { %306 = dma.vmem_to_hbm [thread:$0]  %s304_s7, 128, %s614_s5, [#allocation4]  }
 0x349   :  { %509 = dma.done.wait [#allocation4], 128  }
 0x34a   :  { %510 = vsyncadd [#allocation4], 4294967168 }
 0x34b   :  { %310 = vsyncpa [#allocation3], 1 }
 0x34c   :  { %311 = vsyncpa [#allocation6], 1 }
 0x34d   :  { %312 = vsyncpa [#allocation4], 1 }

// kernel: tpu_custom_call.1
= control target key start
LH: loop header
LB: loop body
LE: loop exit
PB: predicated region body
PF: predicated region fallthrough
CT: control target
= control target key end

     0   :  { %10 = vsyncpa [#allocation3], 0  ;;  %s609_s0 = inlined_call_operand.hbm [shape: f32[8,128], index: 0, kind: input, shape index: {}]   ;;  %s610_s1 = inlined_call_operand.hbm [shape: bf16[128,128], index: 1, kind: input, shape index: {}]   ;;  %s611_s2 = inlined_call_operand.vmem [shape: f32[1,128], index: 2, kind: input, shape index: {}]   ;;  %s612_s3 = inlined_call_operand.hbm [shape: bf16[128,128], index: 3, kind: input, shape index: {}]   ;;  %s613_s4 = inlined_call_operand.vmem [shape: f32[1,128], index: 4, kind: input, shape index: {}]   ;;  %s614_s5 = inlined_call_operand.hbm [shape: f32[8,128], index: 5, kind: output, shape index: {}]  }
   0x1   :  { %11 = vsyncpa [#allocation6], 0 }
   0x2   :  { %12 = vsyncpa [#allocation4], 0  ;;  %s511_s18 = smov [#allocation5]   ;;  %s417_s22 = scalar_lea.hbm %s610_s1, 1024 }
   0x3   :  { %s28_s19 = sshll.u32 %s511_s18, 4  ;;  %p418_p0 = scmp.ne.s32.totalorder %s610_s1, %s417_s22  ;;  %s29_s19 = int_to_ptr.vmem [resolvable:$true] %s28_s19 }
   0x4   :  { %p421_p1 = scmp.lt.u32.totalorder %s417_s22, %s610_s1 }
   0x6   :  { %p423_p2 = pnand %p421_p1, %p418_p0 }
   0x8   :  { %426 = shalt.err (!%p423_p2)
}
   0x9   :  { %s427_s27 = scalar_lea.vmem %s29_s19, 1024  ;;  %p432_p4 = scmp.lt.s32.totalorder %s29_s19, %s29_s19 }
   0xa   :  { %p428_p3 = scmp.ne.s32.totalorder %s29_s19, %s427_s27  ;;  %p433_p5 = scmp.lt.s32.totalorder %s427_s27, %s427_s27 }
   0xc   :  { %p434_p6 = por %p433_p5, %p432_p4 }
   0xe   :  { %p435_p7 = pnand %p434_p6, %p428_p3 }
  0x10   :  { %438 = shalt.err (!%p435_p7)
}
  0x11   :  { %s512_s28 = smov 64   ;;  %s513_s29 = smov 4  }
  0x12   :  { %34 = dma.hbm_to_vmem [thread:$0]  %s610_s1, 1024, %s29_s19, [#allocation6], %s512_s28, %s512_s28, %s513_s29  }
  0x13   :  { %s514_s7 = smov [#allocation2]   ;;  %s515_s9 = smov [#allocation7]  }
  0x14   :  { %s19_s8 = sshll.u32 %s514_s7, 4  ;;  %s42_s10 = sshll.u32 %s515_s9, 4  ;;  %s20_s8 = int_to_ptr.vmem [resolvable:$true] %s19_s8  ;;  %s43_s10 = int_to_ptr.vmem [resolvable:$true] %s42_s10 }
  0x15   :  { %s439_s13 = scalar_lea.hbm %s609_s0, 128 }
  0x16   :  { %p440_p8 = scmp.ne.s32.totalorder %s609_s0, %s439_s13  ;;  %p443_p9 = scmp.lt.u32.totalorder %s439_s13, %s609_s0 }
  0x18   :  { %p445_p10 = pnand %p443_p9, %p440_p8 }
  0x1a   :  { %448 = shalt.err (!%p445_p10)
}
  0x1b   :  { %s449_s1 = scalar_lea.vmem %s20_s8, 128  ;;  %p454_p12 = scmp.lt.s32.totalorder %s20_s8, %s20_s8 }
  0x1c   :  { %p450_p11 = scmp.ne.s32.totalorder %s20_s8, %s449_s1  ;;  %p455_p13 = scmp.lt.s32.totalorder %s449_s1, %s449_s1 }
  0x1e   :  { %p456_p0 = por %p455_p13, %p454_p12 }
  0x20   :  { %p457_p1 = pnand %p456_p0, %p450_p11 }
  0x22   :  { %460 = shalt.err (!%p457_p1)
}
  0x23   :  { %22 = dma.hbm_to_vmem [thread:$0]  %s609_s0, 128, %s20_s8, [#allocation3]  }
  0x24   :  { %s461_s22 = scalar_lea.hbm %s612_s3, 1024 }
  0x25   :  { %p462_p2 = scmp.ne.s32.totalorder %s612_s3, %s461_s22  ;;  %p465_p3 = scmp.lt.u32.totalorder %s461_s22, %s612_s3 }
  0x27   :  { %p467_p4 = pnand %p465_p3, %p462_p2 }
  0x29   :  { %470 = shalt.err (!%p467_p4)
}
  0x2a   :  { %s471_s27 = scalar_lea.vmem %s43_s10, 1024  ;;  %p476_p6 = scmp.lt.s32.totalorder %s43_s10, %s43_s10 }
  0x2b   :  { %p472_p5 = scmp.ne.s32.totalorder %s43_s10, %s471_s27  ;;  %p477_p7 = scmp.lt.s32.totalorder %s471_s27, %s471_s27 }
  0x2d   :  { %p478_p8 = por %p477_p7, %p476_p6 }
  0x2f   :  { %p479_p9 = pnand %p478_p8, %p472_p5 }
  0x31   :  { %482 = shalt.err (!%p479_p9)
}
  0x32   :  { %48 = dma.hbm_to_vmem [thread:$0]  %s612_s3, 1024, %s43_s10, [#allocation6], %s512_s28, %s512_s28, %s513_s29  }
  0x33   :  { %505 = dma.done.wait [#allocation3], 128  }
  0x34   :  { %506 = vsyncadd [#allocation3], 4294967168 }
  0x35   :  { %507 = dma.done.wait [#allocation6], 2048  }
  0x36   :  { %508 = vsyncadd [#allocation6], 4294965248  ;;  %v516_v0 = vmov 0.0   ;;  %vm517_vm0 = vmmov 0   ;;  %v397_v1 = vld [vmem:[#allocation5] sm:$0xff]   ;;  %v398_v2 = vld [vmem:[#allocation5 + $0x8] sm:$0xff]  }
  0x37   :  { %349 = vmatprep.subr.bf16.mxu0 %v516_v0  ;;  %365 = vmatprep.mubr.msk.bf16.mxu0 %vm517_vm0, %v516_v0  ;;  %v399_v3 = vld [vmem:[#allocation5 + $0x10] sm:$0xff]   ;;  %v405_v4 = vld [vmem:[#allocation7] sm:$0xff]   ;;  %v400_v5 = vld [vmem:[#allocation5 + $0x18] sm:$0xff]  }
  0x38   :  { %369 = vmatprep.subr.bf16.mxu1 %v516_v0  ;;  %385 = vmatprep.mubr.msk.bf16.mxu1 %vm517_vm0, %v516_v0  ;;  %v406_v6 = vld [vmem:[#allocation7 + $0x8] sm:$0xff]   ;;  %v401_v7 = vld [vmem:[#allocation5 + $0x20] sm:$0xff]   ;;  %v407_v8 = vld [vmem:[#allocation7 + $0x10] sm:$0xff]  }
  0x39   :  { %350 = vmatpush3.bf16.msra.mxu0 %v397_v1  ;;  %370 = vmatpush3.bf16.msra.mxu1 %v405_v4  ;;  %v402_v9 = vld [vmem:[#allocation5 + $0x28] sm:$0xff]   ;;  %v408_v10 = vld [vmem:[#allocation7 + $0x18] sm:$0xff]   ;;  %v403_v11 = vld [vmem:[#allocation5 + $0x30] sm:$0xff]  }
  0x3a   :  { %351 = vmatprep.subr.bf16.mxu0 %v516_v0  ;;  %371 = vmatprep.subr.bf16.mxu1 %v516_v0  ;;  %v409_v12 = vld [vmem:[#allocation7 + $0x20] sm:$0xff]   ;;  %v404_v13 = vld [vmem:[#allocation5 + $0x38] sm:$0xff]   ;;  %v410_v15 = vld [vmem:[#allocation7 + $0x28] sm:$0xff]  }
  0x3b   :  { %v61_v14 = vld [vmem:[#allocation2] sm:$0xff]  ;;  %v411_v17 = vld [vmem:[#allocation7 + $0x30] sm:$0xff]  }
  0x3c   :  { %v62_v16 = vpack.c.bf16 %v61_v14, %v61_v14  ;;  %v412_v18 = vld [vmem:[#allocation7 + $0x38] sm:$0xff]  }
  0x3d   :  { %352 = vmatpush3.bf16.msra.mxu0 %v398_v2  ;;  %372 = vmatpush3.bf16.msra.mxu1 %v406_v6  ;;  %v313_v19 = vld [vmem:[%s611_s2] ss:$0 sm:$0xff]  ;;  %s518_s2 = smov [#allocation8]  }
  0x3e   :  { %353 = vmatprep.subr.bf16.mxu0 %v516_v0  ;;  %373 = vmatprep.subr.bf16.mxu1 %v516_v0  ;;  %v322_v27 = vld [vmem:[%s613_s4] ss:$0 sm:$0xff]  ;;  %s303_s7 = sshll.u32 %s518_s2, 4  ;;  %s304_s7 = int_to_ptr.vmem [resolvable:$true] %s303_s7 }
  0x3f   :  { %s483_s4 = scalar_lea.vmem %s304_s7, 128  ;;  %p488_p11 = scmp.lt.s32.totalorder %s304_s7, %s304_s7 }
  0x40   :  { %p484_p10 = scmp.ne.s32.totalorder %s304_s7, %s483_s4  ;;  %p489_p12 = scmp.lt.s32.totalorder %s483_s4, %s483_s4 }
  0x41   :  { %354 = vmatpush3.bf16.msra.mxu0 %v399_v3  ;;  %374 = vmatpush3.bf16.msra.mxu1 %v407_v8 }
  0x42   :  { %355 = vmatprep.subr.bf16.mxu0 %v516_v0  ;;  %375 = vmatprep.subr.bf16.mxu1 %v516_v0  ;;  %p490_p13 = por %p489_p12, %p488_p11 }
  0x44   :  { %p491_p0 = pnand %p490_p13, %p484_p10 }
  0x45   :  { %356 = vmatpush3.bf16.msra.mxu0 %v400_v5  ;;  %376 = vmatpush3.bf16.msra.mxu1 %v408_v10 }
  0x46   :  { %357 = vmatprep.subr.bf16.mxu0 %v516_v0  ;;  %377 = vmatprep.subr.bf16.mxu1 %v516_v0 }
  0x49   :  { %358 = vmatpush3.bf16.msra.mxu0 %v401_v7  ;;  %378 = vmatpush3.bf16.msra.mxu1 %v409_v12 }
  0x4a   :  { %359 = vmatprep.subr.bf16.mxu0 %v516_v0  ;;  %379 = vmatprep.subr.bf16.mxu1 %v516_v0 }
  0x4d   :  { %360 = vmatpush3.bf16.msra.mxu0 %v402_v9  ;;  %380 = vmatpush3.bf16.msra.mxu1 %v410_v15 }
  0x4e   :  { %361 = vmatprep.subr.bf16.mxu0 %v516_v0  ;;  %381 = vmatprep.subr.bf16.mxu1 %v516_v0 }
  0x51   :  { %362 = vmatpush3.bf16.msra.mxu0 %v403_v11  ;;  %382 = vmatpush3.bf16.msra.mxu1 %v411_v17 }
  0x52   :  { %363 = vmatprep.subr.bf16.mxu0 %v516_v0  ;;  %383 = vmatprep.subr.bf16.mxu1 %v516_v0 }
  0x55   :  { %364 = vmatpush3.bf16.msra.mxu0 %v404_v13  ;;  %384 = vmatpush3.bf16.msra.mxu1 %v412_v18 }
  0x58   :  { %366 = vmatmul.mubr.bf16.vlgmr.msra.gmra.mrb[0].mxu0 %v62_v16 }
 0x12b   :  { %v168_v20 = vpop.f32.mrb[0].mxu0 }
 0x12c   :  { %v169_v21 = vadd.f32 %v313_v19, %v168_v20  ;;  %v367_v22 = vpop.f32.mrb[1].mxu0 }
 0x12d   :  { %v171_v23 = vpop.f32.mrb[2].mxu0 }
 0x12e   :  { %v174_v24 = vmax.f32 %v169_v21, 0.0  ;;  %v368_v25 = vpop.f32.mrb[3].mxu0 }
 0x130   :  { %v175_v26 = vpack.c.bf16 %v174_v24, %v174_v24 }
 0x132   :  { %386 = vmatmul.mubr.bf16.vlgmr.msra.gmra.mrb[0].mxu1 %v175_v26 }
 0x205   :  { %v281_v28 = vpop.f32.mrb[0].mxu1 }
 0x206   :  { %v282_v29 = vadd.f32 %v322_v27, %v281_v28  ;;  %v387_v30 = vpop.f32.mrb[1].mxu1 }
 0x207   :  { %v284_v31 = vpop.f32.mrb[2].mxu1 }
 0x208   :  { %287 = vmax.xlane.f32.xlu0 %v282_v29  ;;  %v388_v32 = vpop.f32.mrb[3].mxu1 }
 0x295   :  { %v288_v33 = vpop.xlane.xlu0 %287 }
 0x296   :  { %v289_v34 = vsub.f32 %v282_v29, %v288_v33 }
 0x298   :  { %v290_v35 = vmul.f32 1.442695, %v289_v34 }
 0x29a   :  { %413 = vpow2.f32 %v290_v35 }
 0x2a4   :  { %v414_v36 = vpop.eup %413 }
 0x2a5   :  { %292 = vadd.xlane.f32.xlu0 %v414_v36 }
 0x332   :  { %v293_v37 = vpop.xlane.xlu0 %292 }
 0x333   :  { %415 = vrcp.f32 %v293_v37 }
 0x33d   :  { %v416_v38 = vpop.eup %415 }
 0x33e   :  { %v295_v39 = vmul.f32 %v416_v38, %v414_v36 }
 0x340   :  { %296 = vst [vmem:[#allocation8] sm:$0xff] %v295_v39 }
 0x341   :  { %494 = shalt.err (!%p491_p0)
}
 0x342   :  { %s495_s10 = scalar_lea.hbm %s614_s5, 128 }
 0x343   :  { %p496_p1 = scmp.ne.s32.totalorder %s614_s5, %s495_s10  ;;  %p499_p2 = scmp.lt.u32.totalorder %s495_s10, %s614_s5 }
 0x345   :  { %p501_p3 = pnand %p499_p2, %p496_p1 }
 0x347   :  { %504 = shalt.err (!%p501_p3)
}
 0x348   :  { %306 = dma.vmem_to_hbm [thread:$0]  %s304_s7, 128, %s614_s5, [#allocation4]  }
 0x349   :  { %509 = dma.done.wait [#allocation4], 128  }
 0x34a   :  { %510 = vsyncadd [#allocation4], 4294967168 }
 0x34b   :  { %310 = vsyncpa [#allocation3], 1 }
 0x34c   :  { %311 = vsyncpa [#allocation6], 1 }
 0x34d   :  { %312 = vsyncpa [#allocation4], 1 }

</bundles_post_ra>
